<compile_context>
chip_gen: v5e
topology: v5e:2x2
jax: 0.10.0
libtpu: 0.0.40
codegen_flags: <defaults>
</compile_context>

<pallas_src>
import jax
import jax.numpy as jnp
from jax.experimental import pallas as pl
from jax.experimental.pallas import tpu as pltpu


def _round_up(x, m):
    return (x + m - 1) // m * m


def _pick_time_chunk(T, batch, hp, emit_seq, *, max_chunk=64,
                     vmem_budget_bytes=32 * 1024 * 1024):
    """Largest time chunk whose double-buffered per-step VMEM traffic fits a
    conservative budget (v7x has only 64 MiB VMEM)."""
    per_step = 2 * batch * (3 * hp) * 2           # gi chunk, bf16, double-buffered
    if emit_seq:
        per_step += 2 * batch * hp * 2            # seq chunk, bf16, double-buffered
    tc = min(max_chunk, T, max(1, vmem_budget_bytes // per_step))
    return max(1, int(tc))


# --------------------------------------------------------------------------
# Kernel 1: input projection  gi = x @ W_ih(in,3Hp) + b_i   (fully parallel)
# --------------------------------------------------------------------------
def _proj_kernel(x_ref, w_ref, b_ref, gi_ref):
    gi = jnp.dot(x_ref[...], w_ref[...], preferred_element_type=jnp.float32)
    gi_ref[...] = (gi + b_ref[...]).astype(gi_ref.dtype)


def _run_projection(x, w_ih, b_i, *, tile_m):
    rows, in_sz = x.shape
    hp3 = w_ih.shape[1]
    n_tiles = rows // tile_m
    need = 2 * (tile_m * in_sz * 2 + in_sz * hp3 * 2 + tile_m * hp3 * 2) \
        + 2 * hp3 * 4
    limit = int(min(64 * 2 ** 20, max(16 * 2 ** 20, 2 * need)))
    return pl.pallas_call(
        _proj_kernel,
        out_shape=jax.ShapeDtypeStruct((rows, hp3), jnp.bfloat16),
        grid_spec=pltpu.PrefetchScalarGridSpec(
            num_scalar_prefetch=0,
            grid=(n_tiles,),
            in_specs=[
                pl.BlockSpec((tile_m, in_sz), lambda i: (i, 0)),
                pl.BlockSpec((in_sz, hp3), lambda i: (0, 0)),
                pl.BlockSpec((1, hp3), lambda i: (0, 0)),
            ],
            out_specs=pl.BlockSpec((tile_m, hp3), lambda i: (i, 0)),
        ),
        compiler_params=pltpu.CompilerParams(
            dimension_semantics=("parallel",),
            vmem_limit_bytes=limit),
    )(x, w_ih, b_i)


# --------------------------------------------------------------------------
# Kernel 2: the sequential GRU recurrence over pre-projected gi chunks
# --------------------------------------------------------------------------
def _make_recur_kernel(*, emit_seq, batch, hp, tc, t_real):
    """batch = padded batch (multiple of 16), hp = padded hidden (mult of 128),
    tc = timesteps per chunk, t_real = unpadded sequence length (mask)."""

    def kernel(gi_ref, whh_ref, bhn_ref, *rest):
        # gi_ref : (tc*batch, 3*hp) bf16   pre-projected gates [r|z|n] + biases
        # whh_ref: (hp, 3*hp)       bf16   fused hidden weights [r|z|n]
        # bhn_ref: (1, hp)          f32    b_hn (stays inside r * (...))
        # outputs: [seq_ref (tc*batch, hp) bf16]?, h_ref (batch, hp) f32 (resident)
        if emit_seq:
            seq_ref, h_ref = rest
        else:
            (h_ref,) = rest

        @pl.when(pl.program_id(0) == 0)
        def _init():
            h_ref[...] = jnp.zeros_like(h_ref)

        w_hh = whh_ref[...]                                       # hoisted
        b_hn = jnp.broadcast_to(bhn_ref[...], (batch, hp))        # hoisted
        t0 = pl.program_id(0) * tc

        def step(i, h):
            row = pl.multiple_of(i * batch, batch)
            gi = gi_ref[pl.ds(row, batch), :]                     # (batch, 3hp) bf16
            gh = jnp.dot(h.astype(w_hh.dtype), w_hh,
                         preferred_element_type=jnp.float32)      # (batch, 3hp) f32
            r = jax.nn.sigmoid(gi[:, :hp] + gh[:, :hp])
            z = jax.nn.sigmoid(gi[:, hp:2 * hp] + gh[:, hp:2 * hp])
            n = jnp.tanh(gi[:, 2 * hp:] + r * (gh[:, 2 * hp:] + b_hn))
            h_new = n + z * (h - n)
            # Mask padded timesteps (T was padded up to a multiple of tc).
            h_new = jnp.where(t0 + i < t_real, h_new, h)
            if emit_seq:
                seq_ref[pl.ds(row, batch), :] = h_new.astype(seq_ref.dtype)
            return h_new

        h_ref[...] = jax.lax.fori_loop(
            0, tc, step, h_ref[...], unroll=True if tc <= 32 else 8)

    return kernel


def _run_recurrence(gi, w_hh, b_hn, *, batch, hp, tc, t_real, emit_seq):
    rows = gi.shape[0]
    t_pad = rows // batch
    n_chunks = t_pad // tc

    kernel = _make_recur_kernel(emit_seq=emit_seq, batch=batch, hp=hp,
                                tc=tc, t_real=t_real)

    if emit_seq:
        out_shape = (jax.ShapeDtypeStruct((rows, hp), jnp.bfloat16),
                     jax.ShapeDtypeStruct((batch, hp), jnp.float32))
        out_specs = (pl.BlockSpec((tc * batch, hp), lambda c: (c, 0)),
                     pl.BlockSpec((batch, hp), lambda c: (0, 0)))   # resident
    else:
        out_shape = jax.ShapeDtypeStruct((batch, hp), jnp.float32)
        out_specs = pl.BlockSpec((batch, hp), lambda c: (0, 0))      # resident

    need = (2 * tc * batch * 3 * hp * 2                 # gi blocks (x2 buffers)
            + (2 * tc * batch * hp * 2 if emit_seq else 0)
            + 2 * hp * 3 * hp * 2                       # w_hh (x2 buffers)
            + 2 * 8 * hp * 4                            # b_hn (padded tile)
            + 2 * batch * hp * 4)                       # resident h
    limit = int(min(64 * 2 ** 20, max(16 * 2 ** 20, 2 * need)))

    return pl.pallas_call(
        kernel,
        out_shape=out_shape,
        grid_spec=pltpu.PrefetchScalarGridSpec(
            num_scalar_prefetch=0,
            grid=(n_chunks,),
            in_specs=[
                pl.BlockSpec((tc * batch, 3 * hp), lambda c: (c, 0)),
                pl.BlockSpec((hp, 3 * hp), lambda c: (0, 0)),
                pl.BlockSpec((1, hp), lambda c: (0, 0)),
            ],
            out_specs=out_specs,
        ),
        compiler_params=pltpu.CompilerParams(
            dimension_semantics=("arbitrary",),          # recurrence => sequential
            vmem_limit_bytes=limit),
    )(gi, w_hh, b_hn)


# --------------------------------------------------------------------------
# Module wrapper
# --------------------------------------------------------------------------
class EncoderGRUPallas:
    """JAX/Pallas equivalent of the PyTorch EncoderGRU module (forward -> hidden)."""

    def __init__(self, input_size, hidden_size, num_layers=1, dropout=0.0,
                 key=jax.random.PRNGKey(0), max_chunk=64):
        # TODO(synk): inter-layer dropout (training-only) not implemented.
        self.input_size = input_size
        self.hidden_size = hidden_size
        self.num_layers = num_layers
        self.max_chunk = max_chunk
        self.hp = _round_up(hidden_size, 128)            # lane-padded hidden
        hp = self.hp
        pad_h = hp - hidden_size

        self.raw_params = []       # f32 per-gate params (for the JAX reference)
        self.kernel_params = []    # fused + lane-padded bf16 weights, f32 biases

        bound = 1.0 / (hidden_size ** 0.5)
        for layer in range(num_layers):
            in_sz = input_size if layer == 0 else hidden_size
            key, k1, k2, k3, k4 = jax.random.split(key, 5)
            # Per-gate layout (gate order r, z, n); w_ih[g] == W_ig^T.
            w_ih = jax.random.uniform(k1, (3, in_sz, hidden_size),
                                      jnp.float32, -bound, bound)
            w_hh = jax.random.uniform(k2, (3, hidden_size, hidden_size),
                                      jnp.float32, -bound, bound)
            b_ih = jax.random.uniform(k3, (3, hidden_size),
                                      jnp.float32, -bound, bound)
            b_hh = jax.random.uniform(k4, (3, hidden_size),
                                      jnp.float32, -bound, bound)
            self.raw_params.append((w_ih, w_hh, b_ih, b_hh))

            # Fused, lane-padded layouts: [r | z | n] along the 3*hp lane axis.
            wih_f = jnp.concatenate(
                [jnp.pad(w_ih[g], ((0, 0), (0, pad_h))) for g in range(3)], axis=1)
            if layer > 0:
                # layers >0 consume the hp-padded (zero in pad lanes) seq.
                wih_f = jnp.pad(wih_f, ((0, pad_h), (0, 0)))
            whh_f = jnp.concatenate(
                [jnp.pad(w_hh[g], ((0, 0), (0, pad_h))) for g in range(3)], axis=1)
            whh_f = jnp.pad(whh_f, ((0, pad_h), (0, 0)))
            b_i = jnp.concatenate(
                [jnp.pad(b_ih[0] + b_hh[0], (0, pad_h)),   # r: biases commute
                 jnp.pad(b_ih[1] + b_hh[1], (0, pad_h)),   # z: biases commute
                 jnp.pad(b_ih[2], (0, pad_h))])[None, :]   # n: input bias only
            b_hn = jnp.pad(b_hh[2], (0, pad_h))[None, :]   # n: stays inside r*(...)

            self.kernel_params.append((wih_f.astype(jnp.bfloat16),
                                       whh_f.astype(jnp.bfloat16),
                                       b_i, b_hn))

    def __call__(self, input_seq):
        # input_seq: (B, T, input_size), batch_first like PyTorch.
        B, T, _ = input_seq.shape
        bp = _round_up(B, 16)                      # bf16 sublane-packed batch
        hp = self.hp
        emit_any = self.num_layers > 1
        tc = _pick_time_chunk(T, bp, hp, emit_any, max_chunk=self.max_chunk)
        t_pad = _round_up(T, tc)                   # padded steps are masked in-kernel

        x = jnp.transpose(input_seq, (1, 0, 2))                       # (T, B, I)
        x = jnp.pad(x, ((0, t_pad - T), (0, bp - B), (0, 0)))          # zero pad
        x = x.reshape(t_pad * bp, self.input_size).astype(jnp.bfloat16)

        finals = []
        for li, (w_ih, w_hh, b_i, b_hn) in enumerate(self.kernel_params):
            emit_seq = li < self.num_layers - 1
            # Parallel, MXU-efficient input projection (large M = t_pad*bp).
            gi = _run_projection(x, w_ih, b_i, tile_m=tc * bp)
            # Sequential recurrence over time chunks.
            outs = _run_recurrence(gi, w_hh, b_hn, batch=bp, hp=hp,
                                   tc=tc, t_real=T, emit_seq=emit_seq)
            if emit_seq:
                x, h_final = outs          # bf16 hp-padded seq feeds next layer
            else:
                h_final = outs
            finals.append(h_final[:B, :self.hidden_size])
        return jnp.stack(finals, axis=0)   # (num_layers, B, H), float32


# --------------------------------------------------------------------------
# Pure-JAX reference (mirrors the kernel's bf16/f32 precision choices)
# --------------------------------------------------------------------------
def _gru_reference(input_seq, raw_params, hidden_size):
    B = input_seq.shape[0]
    x = jnp.transpose(input_seq, (1, 0, 2)).astype(jnp.bfloat16)   # (T, B, in)
    finals = []
    for (w_ih, w_hh, b_ih, b_hh) in raw_params:
        wih = w_ih.astype(jnp.bfloat16)
        whh = w_hh.astype(jnp.bfloat16)
        b_i = (b_ih[0] + b_hh[0], b_ih[1] + b_hh[1], b_ih[2])
        b_hn = b_hh[2]

        def step(h, xt, wih=wih, whh=whh, b_i=b_i, b_hn=b_hn):
            gi = [(jnp.dot(xt, wih[g], preferred_element_type=jnp.float32)
                   + b_i[g]).astype(jnp.bfloat16) for g in range(3)]
            hb = h.astype(jnp.bfloat16)
            gh = [jnp.dot(hb, whh[g], preferred_element_type=jnp.float32)
                  for g in range(3)]
            r = jax.nn.sigmoid(gi[0] + gh[0])
            z = jax.nn.sigmoid(gi[1] + gh[1])
            n = jnp.tanh(gi[2] + r * (gh[2] + b_hn))
            h_new = n + z * (h - n)
            return h_new, h_new.astype(jnp.bfloat16)

        h0 = jnp.zeros((B, hidden_size), jnp.float32)
        h_last, seq = jax.lax.scan(step, h0, x)
        x = seq                              # bf16 inter-layer activations
        finals.append(h_last)
    return jnp.stack(finals, axis=0)


if __name__ == "__main__":
    B, T = 2, 8
    input_size = 16
    hidden_size = 32

    key = jax.random.PRNGKey(0)
    k_in, k_p1, k_p2, k_p3 = jax.random.split(key, 4)
    input_seq = jax.random.normal(k_in, (B, T, input_size), jnp.float32)

    # Single-layer EncoderGRU (module default).
    model1 = EncoderGRUPallas(input_size, hidden_size, num_layers=1, key=k_p1)
    hidden1 = jax.block_until_ready(model1(input_seq))
    ref1 = _gru_reference(input_seq, model1.raw_params, hidden_size)
    assert hidden1.shape == (1, B, hidden_size)
    assert jnp.allclose(hidden1, ref1, atol=2e-3, rtol=2e-3), "1-layer mismatch"

    # Two layers: exercises the bf16 inter-layer sequence path.
    model2 = EncoderGRUPallas(input_size, hidden_size, num_layers=2, key=k_p2)
    hidden2 = jax.block_until_ready(model2(input_seq))
    ref2 = _gru_reference(input_seq, model2.raw_params, hidden_size)
    assert hidden2.shape == (2, B, hidden_size)
    assert jnp.allclose(hidden2, ref2, atol=2e-3, rtol=2e-3), "2-layer mismatch"

    # Non-divisible T with a small forced chunk: exercises multi-chunk grid
    # iteration and in-kernel masking of padded timesteps.
    T3 = 10
    input_seq3 = jax.random.normal(k_in, (B, T3, input_size), jnp.float32)
    model3 = EncoderGRUPallas(input_size, hidden_size, num_layers=1,
                              key=k_p3, max_chunk=4)
    hidden3 = jax.block_until_ready(model3(input_seq3))
    ref3 = _gru_reference(input_seq3, model3.raw_params, hidden_size)
    assert hidden3.shape == (1, B, hidden_size)
    assert jnp.allclose(hidden3, ref3, atol=2e-3, rtol=2e-3), "chunked/masked mismatch"

    print("KERNEL_OK")
</pallas_src>

<mosaic_0001>
module attributes {stable_mosaic.version = 11 : i64} {
  func.func @_proj_kernel(%arg0: i32, %arg1: memref<128x16xbf16, #tpu.memory_space<vmem>>, %arg2: memref<16x384xbf16, #tpu.memory_space<vmem>>, %arg3: memref<1x384xf32, #tpu.memory_space<vmem>>, %arg4: memref<128x384xbf16, #tpu.memory_space<vmem>>) attributes {dimension_semantics = [#tpu.dimension_semantics<parallel>], iteration_bounds = array<i64: 1>, scalar_prefetch = 0 : i64, scratch_operands = 0 : i64, tpu.core_type = #tpu.core_type<tc>, window_params = [{transform_indices = @transform_0, window_bounds = array<i64: 128, 16>}, {pipeline_mode = #tpu.pipeline_mode<synchronous>, transform_indices = @transform_1, window_bounds = array<i64: 16, 384>}, {pipeline_mode = #tpu.pipeline_mode<synchronous>, transform_indices = @transform_2, window_bounds = array<i64: 1, 384>}, {transform_indices = @transform_3, window_bounds = array<i64: 128, 384>}]} {
    %c0 = arith.constant 0 : index
    %c0_0 = arith.constant 0 : index
    %0 = vector.load %arg1[%c0, %c0_0] : memref<128x16xbf16, #tpu.memory_space<vmem>>, vector<128x16xbf16>
    %c0_1 = arith.constant 0 : index
    %c0_2 = arith.constant 0 : index
    %1 = vector.load %arg2[%c0_1, %c0_2] : memref<16x384xbf16, #tpu.memory_space<vmem>>, vector<16x384xbf16>
    %cst = arith.constant dense<0.000000e+00> : vector<128x384xf32>
    %2 = tpu.matmul %0, %1, %cst {dimension_numbers = #tpu.dot_dimension_numbers<[1], [0], [0], [1], [0, 0, 1, 1], [], []>} : vector<128x16xbf16>, vector<16x384xbf16>, vector<128x384xf32> -> vector<128x384xf32>
    %c0_3 = arith.constant 0 : index
    %c0_4 = arith.constant 0 : index
    %3 = vector.load %arg3[%c0_3, %c0_4] : memref<1x384xf32, #tpu.memory_space<vmem>>, vector<1x384xf32>
    %4 = vector.broadcast %3 : vector<1x384xf32> to vector<128x384xf32>
    %5 = arith.addf %2, %4 : vector<128x384xf32>
    %6 = arith.truncf %5 : vector<128x384xf32> to vector<128x384xbf16>
    %c0_5 = arith.constant 0 : index
    %c0_6 = arith.constant 0 : index
    %7 = vector.load %arg4[%c0_5, %c0_6] : memref<128x384xbf16, #tpu.memory_space<vmem>>, vector<128x384xbf16>
    tpu.vector_store %arg4[%c0_5, %c0_6], %6 {strides = array<i32>} : memref<128x384xbf16, #tpu.memory_space<vmem>>, vector<128x384xbf16>,
    return
  }
  func.func @transform_0(%arg0: i32) -> (i32, i32) {
    %c0_i32 = arith.constant 0 : i32
    %c0_i32_0 = arith.constant 0 : i32
    return %arg0, %c0_i32 : i32, i32
  }
  func.func @transform_1(%arg0: i32) -> (i32, i32) {
    %c0_i32 = arith.constant 0 : i32
    %c0_i32_0 = arith.constant 0 : i32
    %c0_i32_1 = arith.constant 0 : i32
    return %c0_i32, %c0_i32_0 : i32, i32
  }
  func.func @transform_2(%arg0: i32) -> (i32, i32) {
    %c0_i32 = arith.constant 0 : i32
    %c0_i32_0 = arith.constant 0 : i32
    %c0_i32_1 = arith.constant 0 : i32
    return %c0_i32, %c0_i32_0 : i32, i32
  }
  func.func @transform_3(%arg0: i32) -> (i32, i32) {
    %c0_i32 = arith.constant 0 : i32
    %c0_i32_0 = arith.constant 0 : i32
    return %arg0, %c0_i32 : i32, i32
  }
}

</mosaic_0001>

<bundles_post_ra>
// kernel: tpu_custom_call.1
= control target key start
LH: loop header
LB: loop body
LE: loop exit
PB: predicated region body
PF: predicated region fallthrough
CT: control target
= control target key end

     0   :  { %vm100_vm0 = vcmask 130048   ;;  %s614_s0 = inlined_call_operand.vmem [shape: bf16[128,16], index: 0, kind: input, shape index: {}]   ;;  %s615_s1 = inlined_call_operand.vmem [shape: bf16[16,384], index: 1, kind: input, shape index: {}]   ;;  %s616_s2 = inlined_call_operand.vmem [shape: f32[1,384], index: 2, kind: input, shape index: {}]   ;;  %s617_s3 = inlined_call_operand.hbm [shape: bf16[128,384], index: 3, kind: output, shape index: {}]  }
   0x1   :  { %v388_v0 = vld [vmem:[%s615_s1] sm:$0xf]  ;;  %v431_v1 = vld [vmem:[%s615_s1 + $0x8] sm:$0xf0]  ;;  %v430_v2 = vld [vmem:[%s615_s1 + $0x4] sm:$0xf] }
   0x2   :  { %v389_v3 = vor.u32 %v431_v1, %v388_v0  ;;  %v390_v4 = vld [vmem:[%s615_s1 + $0xc] sm:$0xf0]  ;;  %v396_v5 = vld [vmem:[%s615_s1 + $0x8] sm:$0xf]  ;;  %v432_v6 = vld [vmem:[%s615_s1 + $0x10] sm:$0xf0] }
   0x3   :  { %v393_v7 = vor.u32 %v430_v2, %v390_v4  ;;  %v397_v8 = vor.u32 %v432_v6, %v396_v5  ;;  %v422_v9 = vld [vmem:[%s614_s0] sm:$0xff]  ;;  %v428_v10 = vld [vmem:[%s614_s0 + $0x30] sm:$0xff] }
   0x4   :  { %132 = vmatpush.bf16.msra.mxu0 %v389_v3  ;;  %433 = vmatpush.bf16.msra.mxu3 %v389_v3 }
   0x5   :  { %8 = vsyncpa [#allocation3], 0  ;;  %181 = vmatpush.bf16.msra.mxu1 %v393_v7  ;;  %230 = vmatpush.bf16.msra.mxu2 %v397_v8  ;;  %v423_v11 = vld [vmem:[%s614_s0 + $0x8] sm:$0xff]  ;;  %v429_v12 = vld [vmem:[%s614_s0 + $0x38] sm:$0xff]  ;;  %s342_s16 = sshll.u32 %s617_s3, 4  ;;  %s466_s17 = smov 192   ;;  %s343_s16 = int_to_ptr.hbm [resolvable:$true] %s342_s16 }
   0x6   :  { %v424_v13 = vld [vmem:[%s614_s0 + $0x10] sm:$0xff]  ;;  %v425_v14 = vld [vmem:[%s614_s0 + $0x18] sm:$0xff]  ;;  %v426_v15 = vld [vmem:[%s614_s0 + $0x20] sm:$0xff]  ;;  %s467_s18 = smov 12  }
   0x7   :  { %398 = vmatmul.msk.bf16.vlgmr.msra.gmra.mxu0 %vm100_vm0, %v422_v9  ;;  %404 = vmatmul.msk.bf16.vlgmr.msra.gmra.mxu3 %vm100_vm0, %v428_v10  ;;  %v427_v16 = vld [vmem:[%s614_s0 + $0x28] sm:$0xff]  ;;  %v36_v17 = vld [vmem:[%s616_s2] sm:$0x7]  ;;  %s465_s0 = smov [#allocation2]  }
   0x8   :  { %434 = vmatpush.bf16.msrb.mxu3 %v393_v7  ;;  %406 = vmatmul.msk.bf16.vlgmr.msra.gmra.mxu1 %vm100_vm0, %v422_v9  ;;  %v557_v18 = vperm.slane %v36_v17, 0  ;;  %v559_v19 = vperm.slane %v36_v17, 1  ;;  %v563_v25 = vperm.slane %v36_v17, 2  ;;  %s340_s2 = sshll.u32 %s465_s0, 4  ;;  %s341_s2 = int_to_ptr.vmem [resolvable:$true] %s340_s2 }
   0x9   :  { %414 = vmatmul.msk.bf16.vlgmr.msra.gmra.mxu2 %vm100_vm0, %v422_v9 }
   0xc   :  { %435 = vmatpush.bf16.msra.mxu3 %v397_v8 }
  0x17   :  { %399 = vmatmul.msk.bf16.gmra.mxu0 %vm100_vm0, %v423_v11  ;;  %405 = vmatmul.msk.bf16.gmra.mxu3 %vm100_vm0, %v429_v12 }
  0x18   :  { %407 = vmatmul.msk.bf16.gmra.mxu1 %vm100_vm0, %v423_v11 }
  0x19   :  { %415 = vmatmul.msk.bf16.gmra.mxu2 %vm100_vm0, %v423_v11 }
  0x27   :  { %400 = vmatmul.msk.bf16.gmra.mxu0 %vm100_vm0, %v424_v13  ;;  %412 = vmatmul.msk.bf16.vlgmr.msrb.gmra.mxu3 %vm100_vm0, %v428_v10 }
  0x28   :  { %408 = vmatmul.msk.bf16.gmra.mxu1 %vm100_vm0, %v424_v13 }
  0x29   :  { %416 = vmatmul.msk.bf16.gmra.mxu2 %vm100_vm0, %v424_v13 }
  0x37   :  { %401 = vmatmul.msk.bf16.gmra.mxu0 %vm100_vm0, %v425_v14  ;;  %413 = vmatmul.msk.bf16.gmra.mxu3 %vm100_vm0, %v429_v12 }
  0x38   :  { %409 = vmatmul.msk.bf16.gmra.mxu1 %vm100_vm0, %v425_v14 }
  0x39   :  { %417 = vmatmul.msk.bf16.gmra.mxu2 %vm100_vm0, %v425_v14 }
  0x47   :  { %402 = vmatmul.msk.bf16.gmra.mxu0 %vm100_vm0, %v426_v15  ;;  %420 = vmatmul.msk.bf16.vlgmr.msra.gmra.mxu3 %vm100_vm0, %v428_v10 }
  0x48   :  { %410 = vmatmul.msk.bf16.gmra.mxu1 %vm100_vm0, %v426_v15 }
  0x49   :  { %418 = vmatmul.msk.bf16.gmra.mxu2 %vm100_vm0, %v426_v15 }
  0x57   :  { %403 = vmatmul.msk.bf16.gmra.mxu0 %vm100_vm0, %v427_v16  ;;  %421 = vmatmul.msk.bf16.gmra.mxu3 %vm100_vm0, %v429_v12 }
  0x58   :  { %411 = vmatmul.msk.bf16.gmra.mxu1 %vm100_vm0, %v427_v16 }
  0x59   :  { %419 = vmatmul.msk.bf16.gmra.mxu2 %vm100_vm0, %v427_v16 }
  0x84   :  { %v134_v20 = vpop.f32.mrf.mxu0 }
  0x85   :  { %v135_v21 = vadd.f32 %v134_v20, %v557_v18  ;;  %v183_v22 = vpop.f32.mrf.mxu1 }
  0x86   :  { %v184_v23 = vadd.f32 %v183_v22, %v559_v19 }
  0x88   :  { %v272_v24 = vpack.c.bf16 %v184_v23, %v135_v21 }
  0x8a   :  { %304 = vst [vmem:[#allocation2] sm:$0xff] %v272_v24  ;;  %v164_v26 = vpop.f32.mrf.mxu3 }
  0x8b   :  { %v165_v63 = vadd.f32 %v164_v26, %v557_v18 }
  0x8c   :  { %v232_v27 = vpop.f32.mrf.mxu2  ;;  %v136_v29 = vpop.f32.mrf.mxu0 }
  0x8d   :  { %v233_v28 = vadd.f32 %v232_v27, %v563_v25  ;;  %v137_v30 = vadd.f32 %v136_v29, %v557_v18  ;;  %v185_v31 = vpop.f32.mrf.mxu1 }
  0x8e   :  { %v186_v33 = vadd.f32 %v185_v31, %v559_v19 }
  0x8f   :  { %v273_v32 = vpack.c.bf16 %v233_v28, %v233_v28 }
  0x90   :  { %v274_v34 = vpack.c.bf16 %v186_v33, %v137_v30 }
  0x91   :  { %305 = vst [vmem:[#allocation2 + $0x8] sm:$0xf] %v273_v32 }
  0x92   :  { %306 = vst [vmem:[#allocation2 + $0xc] sm:$0xff] %v274_v34  ;;  %v166_v35 = vpop.f32.mrf.mxu3 }
  0x93   :  { %v167_v11 = vadd.f32 %v166_v35, %v557_v18 }
  0x94   :  { %v234_v36 = vpop.f32.mrf.mxu2  ;;  %v139_v38 = vpop.f32.mrf.mxu0 }
  0x95   :  { %v235_v37 = vadd.f32 %v234_v36, %v563_v25  ;;  %v140_v39 = vadd.f32 %v139_v38, %v557_v18  ;;  %v188_v40 = vpop.f32.mrf.mxu1 }
  0x96   :  { %v189_v42 = vadd.f32 %v188_v40, %v559_v19 }
  0x97   :  { %v275_v41 = vpack.c.bf16 %v235_v37, %v235_v37 }
  0x98   :  { %v276_v43 = vpack.c.bf16 %v189_v42, %v140_v39 }
  0x99   :  { %307 = vst [vmem:[#allocation2 + $0x14] sm:$0xf] %v275_v41 }
  0x9a   :  { %308 = vst [vmem:[#allocation2 + $0x18] sm:$0xff] %v276_v43  ;;  %v169_v44 = vpop.f32.mrf.mxu3 }
  0x9b   :  { %v170_v26 = vadd.f32 %v169_v44, %v557_v18 }
  0x9c   :  { %v237_v45 = vpop.f32.mrf.mxu2  ;;  %v141_v47 = vpop.f32.mrf.mxu0 }
  0x9d   :  { %v238_v46 = vadd.f32 %v237_v45, %v563_v25  ;;  %v142_v48 = vadd.f32 %v141_v47, %v557_v18  ;;  %v190_v49 = vpop.f32.mrf.mxu1 }
  0x9e   :  { %v191_v51 = vadd.f32 %v190_v49, %v559_v19 }
  0x9f   :  { %v277_v50 = vpack.c.bf16 %v238_v46, %v238_v46 }
  0xa0   :  { %v278_v52 = vpack.c.bf16 %v191_v51, %v142_v48 }
  0xa1   :  { %309 = vst [vmem:[#allocation2 + $0x20] sm:$0xf] %v277_v50 }
  0xa2   :  { %310 = vst [vmem:[#allocation2 + $0x24] sm:$0xff] %v278_v52  ;;  %v171_v53 = vpop.f32.mrf.mxu3 }
  0xa3   :  { %v172_v38 = vadd.f32 %v171_v53, %v557_v18 }
  0xa4   :  { %v239_v54 = vpop.f32.mrf.mxu2  ;;  %v144_v56 = vpop.f32.mrf.mxu0 }
  0xa5   :  { %v240_v55 = vadd.f32 %v239_v54, %v563_v25  ;;  %v145_v57 = vadd.f32 %v144_v56, %v557_v18  ;;  %v193_v58 = vpop.f32.mrf.mxu1 }
  0xa6   :  { %v194_v60 = vadd.f32 %v193_v58, %v559_v19 }
  0xa7   :  { %v279_v59 = vpack.c.bf16 %v240_v55, %v240_v55 }
  0xa8   :  { %v280_v61 = vpack.c.bf16 %v194_v60, %v145_v57 }
  0xa9   :  { %311 = vst [vmem:[#allocation2 + $0x2c] sm:$0xf] %v279_v59 }
  0xaa   :  { %312 = vst [vmem:[#allocation2 + $0x30] sm:$0xff] %v280_v61  ;;  %v213_v62 = vpop.f32.mrf.mxu3 }
  0xab   :  { %v214_v0 = vadd.f32 %v213_v62, %v559_v19 }
  0xac   :  { %v242_v1 = vpop.f32.mrf.mxu2  ;;  %v146_v3 = vpop.f32.mrf.mxu0 }
  0xad   :  { %v243_v2 = vadd.f32 %v242_v1, %v563_v25  ;;  %v296_v4 = vpack.c.bf16 %v214_v0, %v165_v63  ;;  %v147_v5 = vadd.f32 %v146_v3, %v557_v18  ;;  %v195_v6 = vpop.f32.mrf.mxu1 }
  0xae   :  { %v196_v8 = vadd.f32 %v195_v6, %v559_v19 }
  0xaf   :  { %v281_v7 = vpack.c.bf16 %v243_v2, %v243_v2  ;;  %328 = vst [vmem:[#allocation2 + $0x90] sm:$0xff] %v296_v4 }
  0xb0   :  { %v282_v9 = vpack.c.bf16 %v196_v8, %v147_v5 }
  0xb1   :  { %313 = vst [vmem:[#allocation2 + $0x38] sm:$0xf] %v281_v7 }
  0xb2   :  { %314 = vst [vmem:[#allocation2 + $0x3c] sm:$0xff] %v282_v9  ;;  %v215_v10 = vpop.f32.mrf.mxu3 }
  0xb3   :  { %v216_v12 = vadd.f32 %v215_v10, %v559_v19 }
  0xb4   :  { %v244_v13 = vpop.f32.mrf.mxu2  ;;  %v149_v15 = vpop.f32.mrf.mxu0 }
  0xb5   :  { %v245_v14 = vadd.f32 %v244_v13, %v563_v25  ;;  %v298_v16 = vpack.c.bf16 %v216_v12, %v167_v11  ;;  %v150_v17 = vadd.f32 %v149_v15, %v557_v18  ;;  %v198_v20 = vpop.f32.mrf.mxu1 }
  0xb6   :  { %v199_v22 = vadd.f32 %v198_v20, %v559_v19 }
  0xb7   :  { %v283_v21 = vpack.c.bf16 %v245_v14, %v245_v14  ;;  %330 = vst [vmem:[#allocation2 + $0x9c] sm:$0xff] %v298_v16 }
  0xb8   :  { %v284_v23 = vpack.c.bf16 %v199_v22, %v150_v17 }
  0xb9   :  { %315 = vst [vmem:[#allocation2 + $0x44] sm:$0xf] %v283_v21 }
  0xba   :  { %316 = vst [vmem:[#allocation2 + $0x48] sm:$0xff] %v284_v23  ;;  %v218_v24 = vpop.f32.mrf.mxu3 }
  0xbb   :  { %v219_v27 = vadd.f32 %v218_v24, %v559_v19 }
  0xbc   :  { %v247_v28 = vpop.f32.mrf.mxu2  ;;  %v151_v30 = vpop.f32.mrf.mxu0 }
  0xbd   :  { %v248_v29 = vadd.f32 %v247_v28, %v563_v25  ;;  %v300_v31 = vpack.c.bf16 %v219_v27, %v170_v26  ;;  %v152_v32 = vadd.f32 %v151_v30, %v557_v18  ;;  %v200_v33 = vpop.f32.mrf.mxu1 }
  0xbe   :  { %v201_v35 = vadd.f32 %v200_v33, %v559_v19 }
  0xbf   :  { %v285_v34 = vpack.c.bf16 %v248_v29, %v248_v29  ;;  %332 = vst [vmem:[#allocation2 + $0xa8] sm:$0xff] %v300_v31 }
  0xc0   :  { %v286_v36 = vpack.c.bf16 %v201_v35, %v152_v32 }
  0xc1   :  { %317 = vst [vmem:[#allocation2 + $0x50] sm:$0xf] %v285_v34 }
  0xc2   :  { %318 = vst [vmem:[#allocation2 + $0x54] sm:$0xff] %v286_v36  ;;  %v220_v37 = vpop.f32.mrf.mxu3 }
  0xc3   :  { %v221_v39 = vadd.f32 %v220_v37, %v559_v19 }
  0xc4   :  { %v249_v40 = vpop.f32.mrf.mxu2  ;;  %v154_v42 = vpop.f32.mrf.mxu0 }
  0xc5   :  { %v250_v41 = vadd.f32 %v249_v40, %v563_v25  ;;  %v302_v43 = vpack.c.bf16 %v221_v39, %v172_v38  ;;  %v155_v44 = vadd.f32 %v154_v42, %v557_v18  ;;  %v203_v45 = vpop.f32.mrf.mxu1 }
  0xc6   :  { %v204_v47 = vadd.f32 %v203_v45, %v559_v19 }
  0xc7   :  { %v287_v46 = vpack.c.bf16 %v250_v41, %v250_v41  ;;  %334 = vst [vmem:[#allocation2 + $0xb4] sm:$0xff] %v302_v43 }
  0xc8   :  { %v288_v48 = vpack.c.bf16 %v204_v47, %v155_v44 }
  0xc9   :  { %319 = vst [vmem:[#allocation2 + $0x5c] sm:$0xf] %v287_v46 }
  0xca   :  { %320 = vst [vmem:[#allocation2 + $0x60] sm:$0xff] %v288_v48  ;;  %v262_v49 = vpop.f32.mrf.mxu3 }
  0xcb   :  { %v263_v51 = vadd.f32 %v262_v49, %v563_v25 }
  0xcc   :  { %v252_v50 = vpop.f32.mrf.mxu2  ;;  %v156_v53 = vpop.f32.mrf.mxu0 }
  0xcd   :  { %v253_v52 = vadd.f32 %v252_v50, %v563_v25  ;;  %v297_v54 = vpack.c.bf16 %v263_v51, %v263_v51  ;;  %v157_v55 = vadd.f32 %v156_v53, %v557_v18  ;;  %v205_v56 = vpop.f32.mrf.mxu1 }
  0xce   :  { %v206_v58 = vadd.f32 %v205_v56, %v559_v19 }
  0xcf   :  { %v289_v57 = vpack.c.bf16 %v253_v52, %v253_v52  ;;  %329 = vst [vmem:[#allocation2 + $0x98] sm:$0xf] %v297_v54 }
  0xd0   :  { %v290_v59 = vpack.c.bf16 %v206_v58, %v157_v55 }
  0xd1   :  { %321 = vst [vmem:[#allocation2 + $0x68] sm:$0xf] %v289_v57 }
  0xd2   :  { %322 = vst [vmem:[#allocation2 + $0x6c] sm:$0xff] %v290_v59  ;;  %v264_v60 = vpop.f32.mrf.mxu3 }
  0xd3   :  { %v265_v62 = vadd.f32 %v264_v60, %v563_v25 }
  0xd4   :  { %v254_v61 = vpop.f32.mrf.mxu2  ;;  %v159_v0 = vpop.f32.mrf.mxu0 }
  0xd5   :  { %v255_v63 = vadd.f32 %v254_v61, %v563_v25  ;;  %v299_v1 = vpack.c.bf16 %v265_v62, %v265_v62  ;;  %v160_v2 = vadd.f32 %v159_v0, %v557_v18  ;;  %v208_v3 = vpop.f32.mrf.mxu1 }
  0xd6   :  { %v209_v5 = vadd.f32 %v208_v3, %v559_v19 }
  0xd7   :  { %v291_v4 = vpack.c.bf16 %v255_v63, %v255_v63  ;;  %331 = vst [vmem:[#allocation2 + $0xa4] sm:$0xf] %v299_v1 }
  0xd8   :  { %v292_v6 = vpack.c.bf16 %v209_v5, %v160_v2 }
  0xd9   :  { %323 = vst [vmem:[#allocation2 + $0x74] sm:$0xf] %v291_v4 }
  0xda   :  { %324 = vst [vmem:[#allocation2 + $0x78] sm:$0xff] %v292_v6  ;;  %v267_v7 = vpop.f32.mrf.mxu3 }
  0xdb   :  { %v268_v9 = vadd.f32 %v267_v7, %v563_v25 }
  0xdc   :  { %v257_v8 = vpop.f32.mrf.mxu2  ;;  %v161_v11 = vpop.f32.mrf.mxu0 }
  0xdd   :  { %v258_v10 = vadd.f32 %v257_v8, %v563_v25  ;;  %v301_v12 = vpack.c.bf16 %v268_v9, %v268_v9  ;;  %v162_v13 = vadd.f32 %v161_v11, %v557_v18  ;;  %v210_v14 = vpop.f32.mrf.mxu1 }
  0xde   :  { %v211_v16 = vadd.f32 %v210_v14, %v559_v19 }
  0xdf   :  { %v293_v15 = vpack.c.bf16 %v258_v10, %v258_v10  ;;  %333 = vst [vmem:[#allocation2 + $0xb0] sm:$0xf] %v301_v12 }
  0xe0   :  { %v294_v17 = vpack.c.bf16 %v211_v16, %v162_v13 }
  0xe1   :  { %325 = vst [vmem:[#allocation2 + $0x80] sm:$0xf] %v293_v15 }
  0xe2   :  { %326 = vst [vmem:[#allocation2 + $0x84] sm:$0xff] %v294_v17  ;;  %v269_v20 = vpop.f32.mrf.mxu3 }
  0xe3   :  { %v270_v22 = vadd.f32 %v269_v20, %v563_v25 }
  0xe4   :  { %v259_v21 = vpop.f32.mrf.mxu2 }
  0xe5   :  { %v260_v18 = vadd.f32 %v259_v21, %v563_v25  ;;  %v303_v23 = vpack.c.bf16 %v270_v22, %v270_v22 }
  0xe7   :  { %v295_v19 = vpack.c.bf16 %v260_v18, %v260_v18  ;;  %335 = vst [vmem:[#allocation2 + $0xbc] sm:$0xf] %v303_v23 }
  0xe9   :  { %327 = vst [vmem:[#allocation2 + $0x8c] sm:$0xf] %v295_v19 }
  0xea   :  { %348 = dma.vmem_to_hbm [thread:$0]  %s341_s2, 3072, %s343_s16, [#allocation3], %s466_s17, %s466_s17, %s467_s18  }
  0xeb   :  { %463 = dma.done.wait [#allocation3], 3072  }
  0xec   :  { %464 = vsyncadd [#allocation3], 4294964224 }
  0xed   :  { %353 = vsyncpa [#allocation3], 1 }

</bundles_post_ra>
